<compile_context>
chip_gen: v7x
topology: tpu7x:2x2x1
jax: 0.10.0
libtpu: 0.0.40
codegen_flags: <defaults>
</compile_context>

<pallas_src>
import math
from functools import partial

import jax
import jax.numpy as jnp
from jax.experimental import pallas as pl
from jax.experimental.pallas import tpu as pltpu


# ----------------------------- helpers ---------------------------------------

def _round_up(x: int, m: int) -> int:
    return ((x + m - 1) // m) * m


def _vmem_limit_bytes(tm: int, tn: int, tk: int, out_bytes: int) -> int:
    """Scoped-VMEM limit sized from the actual double-buffered tile footprint.

    Lower bound 32 MiB, upper bound 64 MiB so the request is always valid on
    v7x (64 MiB physical VMEM) while still letting v5e/v6e use bigger tiles.
    """
    needed = (2 * tm * tk * 2          # double-buffered bf16 activations
              + 2 * tk * tn * 2        # double-buffered bf16 weights
              + 2 * tm * tn * out_bytes  # double-buffered output tiles
              + 2 * tn * 4)            # bias
    return max(32 * 1024 * 1024, min(int(needed * 1.5) + (4 << 20), 64 * 1024 * 1024))


# ----------------------------- Pallas kernels ---------------------------------

def _linear_head_ws_kernel(x_ref, w_ref, b_ref, o_ref):
    """Weight-stationary tile: y = x @ W + b with the full K axis in one block.

    x_ref: (tm, K)  bf16     w_ref: (K, tn) bf16
    b_ref: (1, tn)  f32      o_ref: (tm, tn) activation dtype
    Grid is (N, M) with N outer -> w_ref's block index depends only on the N
    grid coordinate, so the weight tile stays VMEM-resident across all M steps.
    """
    acc = jnp.dot(x_ref[...], w_ref[...], preferred_element_type=jnp.float32)
    o_ref[...] = (acc + b_ref[...]).astype(o_ref.dtype)


def _linear_head_ktiled_kernel(x_ref, w_ref, b_ref, o_ref):
    """K-tiled fallback (F too large for a single block).

    Accumulates directly into the resident f32 o_ref (same (i, j) output block
    across the innermost K axis); bias is folded into the k == 0 init, so there
    is no scratch accumulator and no finalize pass.
    """
    k = pl.program_id(2)

    @pl.when(k == 0)
    def _():
        o_ref[...] = jnp.broadcast_to(b_ref[...], o_ref.shape)

    o_ref[...] += jnp.dot(x_ref[...], w_ref[...],
                          preferred_element_type=jnp.float32)


# ------------------------------ wrappers --------------------------------------

def prepare_head_params(w, b, *, tn_max=512, tk_max=4096,
                        compute_dtype=jnp.bfloat16):
    """One-time prep of nn.Linear params for the Pallas head.

    w: (features_dim, num_classes)  (already transposed for x @ W on the MXU)
    b: (num_classes,)

    Pads to (8,128)-aligned slabs and casts matmul operands to bf16 ONCE, so the
    per-forward path never re-reads/re-writes the weight matrix through XLA.
    Returns (w_padded, b_padded, static_meta) where static_meta feeds the jitted
    forward as static arguments.
    """
    F, C = w.shape
    assert b.shape == (C,)

    F_pad = _round_up(F, 128)
    if F_pad <= tk_max:
        tk = F_pad                      # whole K axis in one block -> weight stationary
    else:
        tk = tk_max
        F_pad = _round_up(F, tk)

    tn = min(tn_max, _round_up(C, 128))
    C_pad = _round_up(C, tn)

    w_p = jnp.pad(w.astype(compute_dtype), ((0, F_pad - F), (0, C_pad - C)))
    b_p = jnp.pad(b.astype(jnp.float32), (0, C_pad - C)).reshape(1, C_pad)

    meta = dict(features_dim=F, num_classes=C, tn=tn, tk=tk)
    return w_p, b_p, meta


def linear_head(f, w_p, b_p, *, num_classes, tn, tk, tm_max=256):
    """Pallas nn.Linear: f (B, F) @ w_p (F_pad, C_pad) + b_p -> (B, num_classes).

    w_p / b_p must come from prepare_head_params (pre-padded, pre-cast).
    """
    B, F = f.shape
    F_pad, C_pad = w_p.shape
    out_dtype = f.dtype
    out_bytes = jnp.dtype(out_dtype).itemsize

    tm = min(tm_max, _round_up(B, 8))
    B_pad = _round_up(B, tm)

    n_k = F_pad // tk
    grid_i = B_pad // tm
    grid_j = C_pad // tn

    # v7x has 2 TensorCores sharing the parallel grid axes: if the grid would
    # collapse to 1x1 but the batch is big enough, split M so both cores work.
    if n_k == 1 and grid_i == 1 and grid_j == 1 and B_pad % 16 == 0 and tm >= 16:
        tm = tm // 2
        grid_i = B_pad // tm

    # Pad / cast activations only when actually required.
    x_p = f if f.dtype == jnp.bfloat16 else f.astype(jnp.bfloat16)
    if B_pad != B or F_pad != F:
        x_p = jnp.pad(x_p, ((0, B_pad - B), (0, F_pad - F)))

    vmem_limit = _vmem_limit_bytes(tm, tn, tk, out_bytes if n_k == 1 else 4)

    if n_k == 1:
        # Weight-stationary: grid (N, M); W tile re-used across all M steps.
        out = pl.pallas_call(
            _linear_head_ws_kernel,
            out_shape=jax.ShapeDtypeStruct((B_pad, C_pad), out_dtype),
            grid_spec=pltpu.PrefetchScalarGridSpec(
                num_scalar_prefetch=0,
                grid=(grid_j, grid_i),
                in_specs=[
                    pl.BlockSpec((tm, tk), lambda j, i: (i, 0)),   # activations
                    pl.BlockSpec((tk, tn), lambda j, i: (0, j)),   # weights (stationary in j)
                    pl.BlockSpec((1, tn), lambda j, i: (0, j)),    # bias
                ],
                out_specs=pl.BlockSpec((tm, tn), lambda j, i: (i, j)),
            ),
            compiler_params=pltpu.CompilerParams(
                dimension_semantics=("parallel", "parallel"),
                vmem_limit_bytes=vmem_limit,
            ),
        )(x_p, w_p, b_p)
        return out[:B, :num_classes]

    # Fallback: K-tiled reduction, accumulate into resident f32 o_ref.
    out = pl.pallas_call(
        _linear_head_ktiled_kernel,
        out_shape=jax.ShapeDtypeStruct((B_pad, C_pad), jnp.float32),
        grid_spec=pltpu.PrefetchScalarGridSpec(
            num_scalar_prefetch=0,
            grid=(grid_i, grid_j, n_k),
            in_specs=[
                pl.BlockSpec((tm, tk), lambda i, j, k: (i, k)),
                pl.BlockSpec((tk, tn), lambda i, j, k: (k, j)),
                pl.BlockSpec((1, tn), lambda i, j, k: (0, j)),
            ],
            out_specs=pl.BlockSpec((tm, tn), lambda i, j, k: (i, j)),
        ),
        compiler_params=pltpu.CompilerParams(
            dimension_semantics=("parallel", "parallel", "arbitrary"),
            vmem_limit_bytes=vmem_limit,
        ),
    )(x_p, w_p, b_p)
    return out[:B, :num_classes].astype(out_dtype)


@partial(jax.jit,
         static_argnames=("features_dim", "num_classes", "tn", "tk", "tm_max"))
def classifier_base_forward(x, w_p, b_p, *, features_dim, num_classes, tn, tk,
                            tm_max=256):
    """Mirrors ClassifierBase.forward: returns (predictions, features)."""
    # TODO(synk): `backbone` is an arbitrary user-supplied nn.Module with no
    # generic Pallas equivalent; it is treated as identity here and `x` is the
    # backbone output (any shape whose trailing dims flatten to out_features).
    f = x.reshape(-1, features_dim)      # f = backbone(x).view(-1, out_features)
    # bottleneck is nn.Identity() in the default construction -> no-op.
    predictions = linear_head(f, w_p, b_p, num_classes=num_classes,
                              tn=tn, tk=tk, tm_max=tm_max)
    return predictions, f


# --------------------------- parameter init -----------------------------------

def init_head_params(key, in_feature, num_classes, dtype=jnp.float32):
    """Default torch nn.Linear init: U(-1/sqrt(fan_in), 1/sqrt(fan_in)).
    Weight returned already transposed to (F, C) for x @ W on the MXU."""
    kw, kb = jax.random.split(key)
    bound = 1.0 / math.sqrt(in_feature)
    w = jax.random.uniform(kw, (in_feature, num_classes), dtype,
                           minval=-bound, maxval=bound)
    b = jax.random.uniform(kb, (num_classes,), dtype,
                           minval=-bound, maxval=bound)
    return w, b


# --------------------------------- main ----------------------------------------

if __name__ == "__main__":
    key = jax.random.PRNGKey(0)
    k_param, k_x = jax.random.split(key)

    # Small shapes: "backbone output" (B, 2, 4, 4) -> out_features = 32, 16 classes.
    B, C_in, H, W_sp = 2, 2, 4, 4
    out_features = C_in * H * W_sp          # 32
    num_classes = 16

    w, b = init_head_params(k_param, out_features, num_classes)
    w_p, b_p, meta = prepare_head_params(w, b)     # one-time pad + bf16 cast
    x = jax.random.normal(k_x, (B, C_in, H, W_sp), jnp.float32)

    preds, feats = jax.block_until_ready(
        classifier_base_forward(x, w_p, b_p, **meta))

    # Pure-JAX reference (f32 end-to-end).
    f_ref = x.reshape(-1, out_features)
    preds_ref = f_ref @ w + b

    assert preds.shape == (B, num_classes)
    assert feats.shape == (B, out_features)
    assert preds.dtype == x.dtype
    assert jnp.allclose(feats, f_ref)
    # bf16 matmul operands with f32 accumulation -> slightly looser tolerance.
    assert jnp.allclose(preds, preds_ref, atol=2e-2, rtol=2e-2), (
        float(jnp.max(jnp.abs(preds - preds_ref))))

    print("KERNEL_OK")
</pallas_src>

<mosaic_0001>
module attributes {stable_mosaic.version = 11 : i64} {
  func.func @_linear_head_ws_kernel(%arg0: i32, %arg1: i32, %arg2: memref<8x128xbf16, #tpu.memory_space<vmem>>, %arg3: memref<128x128xbf16, #tpu.memory_space<vmem>>, %arg4: memref<1x128xf32, #tpu.memory_space<vmem>>, %arg5: memref<8x128xf32, #tpu.memory_space<vmem>>) attributes {dimension_semantics = [#tpu.dimension_semantics<parallel>, #tpu.dimension_semantics<parallel>], iteration_bounds = array<i64: 1, 1>, scalar_prefetch = 0 : i64, scratch_operands = 0 : i64, tpu.core_type = #tpu.core_type<tc>, window_params = [{transform_indices = @transform_0, window_bounds = array<i64: 8, 128>}, {transform_indices = @transform_1, window_bounds = array<i64: 128, 128>}, {transform_indices = @transform_2, window_bounds = array<i64: 1, 128>}, {transform_indices = @transform_3, window_bounds = array<i64: 8, 128>}]} {
    %c0 = arith.constant 0 : index
    %c0_0 = arith.constant 0 : index
    %0 = vector.load %arg2[%c0, %c0_0] : memref<8x128xbf16, #tpu.memory_space<vmem>>, vector<8x128xbf16>
    %c0_1 = arith.constant 0 : index
    %c0_2 = arith.constant 0 : index
    %1 = vector.load %arg3[%c0_1, %c0_2] : memref<128x128xbf16, #tpu.memory_space<vmem>>, vector<128x128xbf16>
    %cst = arith.constant dense<0.000000e+00> : vector<8x128xf32>
    %2 = tpu.matmul %0, %1, %cst {dimension_numbers = #tpu.dot_dimension_numbers<[1], [0], [0], [1], [0, 0, 1, 1], [], []>} : vector<8x128xbf16>, vector<128x128xbf16>, vector<8x128xf32> -> vector<8x128xf32>
    %c0_3 = arith.constant 0 : index
    %c0_4 = arith.constant 0 : index
    %3 = vector.load %arg4[%c0_3, %c0_4] : memref<1x128xf32, #tpu.memory_space<vmem>>, vector<1x128xf32>
    %4 = vector.broadcast %3 : vector<1x128xf32> to vector<8x128xf32>
    %5 = arith.addf %2, %4 : vector<8x128xf32>
    %c0_5 = arith.constant 0 : index
    %c0_6 = arith.constant 0 : index
    %6 = vector.load %arg5[%c0_5, %c0_6] : memref<8x128xf32, #tpu.memory_space<vmem>>, vector<8x128xf32>
    tpu.vector_store %arg5[%c0_5, %c0_6], %5 {strides = array<i32>} : memref<8x128xf32, #tpu.memory_space<vmem>>, vector<8x128xf32>,
    return
  }
  func.func @transform_0(%arg0: i32, %arg1: i32) -> (i32, i32) {
    %c0_i32 = arith.constant 0 : i32
    %c0_i32_0 = arith.constant 0 : i32
    return %arg1, %c0_i32 : i32, i32
  }
  func.func @transform_1(%arg0: i32, %arg1: i32) -> (i32, i32) {
    %c0_i32 = arith.constant 0 : i32
    %c0_i32_0 = arith.constant 0 : i32
    return %c0_i32, %arg0 : i32, i32
  }
  func.func @transform_2(%arg0: i32, %arg1: i32) -> (i32, i32) {
    %c0_i32 = arith.constant 0 : i32
    %c0_i32_0 = arith.constant 0 : i32
    return %c0_i32, %arg0 : i32, i32
  }
  func.func @transform_3(%arg0: i32, %arg1: i32) -> (i32, i32) {
    %c0_i32 = arith.constant 0 : i32
    return %arg1, %arg0 : i32, i32
  }
}

</mosaic_0001>

<bundles_post_ra>
// kernel: classifier_base_forward.1
= control target key start
LH: loop header
LB: loop body
LE: loop exit
PB: predicated region body
PF: predicated region fallthrough
CT: control target
= control target key end

     0   :  { %8 = vsyncpa [#allocation3], 0  ;;  %s222_s12 = smov [#allocation2]   ;;  %s268_s0 = inlined_call_operand.vmem [shape: bf16[8,128], index: 0, kind: input, shape index: {}]   ;;  %s269_s1 = inlined_call_operand.hbm [shape: bf16[128,128], index: 1, kind: input, shape index: {}]   ;;  %s270_s2 = inlined_call_operand.vmem [shape: f32[1,128], index: 2, kind: input, shape index: {}]   ;;  %s271_s3 = inlined_call_operand.vmem [shape: f32[8,128], index: 3, kind: output, shape index: {}]  }
   0x1   :  { %s16_s13 = sshll.u32 %s222_s12, 4  ;;  %s198_s16 = scalar_lea.hbm %s269_s1, 1024  ;;  %s17_s13 = int_to_ptr.vmem [resolvable:$true] %s16_s13 }
   0x2   :  { %p199_p0 = scmp.ne.s32.totalorder %s269_s1, %s198_s16  ;;  %p202_p1 = scmp.lt.u32.totalorder %s198_s16, %s269_s1 }
   0x4   :  { %p204_p2 = pnand %p202_p1, %p199_p0 }
   0x6   :  { %207 = shalt.err (!%p204_p2)
}
   0x7   :  { %s208_s21 = scalar_lea.vmem %s17_s13, 1024  ;;  %p213_p4 = scmp.lt.s32.totalorder %s17_s13, %s17_s13 }
   0x8   :  { %p209_p3 = scmp.ne.s32.totalorder %s17_s13, %s208_s21  ;;  %p214_p5 = scmp.lt.s32.totalorder %s208_s21, %s208_s21 }
   0xa   :  { %p215_p6 = por %p214_p5, %p213_p4 }
   0xc   :  { %p216_p7 = pnand %p215_p6, %p209_p3 }
   0xe   :  { %219 = shalt.err (!%p216_p7)
}
   0xf   :  { %s223_s22 = smov 64   ;;  %s224_s23 = smov 4  }
  0x10   :  { %22 = dma.hbm_to_vmem [thread:$0]  %s269_s1, 1024, %s17_s13, [#allocation3], %s223_s22, %s223_s22, %s224_s23  }
  0x11   :  { %220 = dma.done.wait [#allocation3], 1024  }
  0x12   :  { %221 = vsyncadd [#allocation3], 4294966272  ;;  %v225_v0 = vmov 0.0   ;;  %vm226_vm0 = vmmov 0   ;;  %v190_v1 = vld [vmem:[#allocation2] sm:$0xff]   ;;  %v191_v2 = vld [vmem:[#allocation2 + $0x8] sm:$0xff]  }
  0x13   :  { %165 = vmatprep.subr.bf16.mxu0 %v225_v0  ;;  %181 = vmatprep.mubr.msk.bf16.mxu0 %vm226_vm0, %v225_v0  ;;  %v192_v3 = vld [vmem:[#allocation2 + $0x10] sm:$0xff]   ;;  %v193_v4 = vld [vmem:[#allocation2 + $0x18] sm:$0xff]   ;;  %v194_v5 = vld [vmem:[#allocation2 + $0x20] sm:$0xff]  }
  0x14   :  { %166 = vmatpush3.bf16.msra.mxu0 %v190_v1  ;;  %v195_v6 = vld [vmem:[#allocation2 + $0x28] sm:$0xff]   ;;  %v196_v7 = vld [vmem:[#allocation2 + $0x30] sm:$0xff]   ;;  %v197_v8 = vld [vmem:[#allocation2 + $0x38] sm:$0xff]  }
  0x15   :  { %167 = vmatprep.subr.bf16.mxu0 %v225_v0  ;;  %v29_v9 = vld [vmem:[%s268_s0] sm:$0xf] }
  0x16   :  { %v147_v10 = vld [vmem:[%s270_s2] ss:$0 sm:$0xff] }
  0x18   :  { %168 = vmatpush3.bf16.msra.mxu0 %v191_v2 }
  0x19   :  { %169 = vmatprep.subr.bf16.mxu0 %v225_v0 }
  0x1c   :  { %170 = vmatpush3.bf16.msra.mxu0 %v192_v3 }
  0x1d   :  { %171 = vmatprep.subr.bf16.mxu0 %v225_v0 }
  0x20   :  { %172 = vmatpush3.bf16.msra.mxu0 %v193_v4 }
  0x21   :  { %173 = vmatprep.subr.bf16.mxu0 %v225_v0 }
  0x24   :  { %174 = vmatpush3.bf16.msra.mxu0 %v194_v5 }
  0x25   :  { %175 = vmatprep.subr.bf16.mxu0 %v225_v0 }
  0x28   :  { %176 = vmatpush3.bf16.msra.mxu0 %v195_v6 }
  0x29   :  { %177 = vmatprep.subr.bf16.mxu0 %v225_v0 }
  0x2c   :  { %178 = vmatpush3.bf16.msra.mxu0 %v196_v7 }
  0x2d   :  { %179 = vmatprep.subr.bf16.mxu0 %v225_v0 }
  0x30   :  { %180 = vmatpush3.bf16.msra.mxu0 %v197_v8 }
  0x33   :  { %182 = vmatmul.mubr.bf16.vlgmr.msra.gmra.mrb[0].mxu0 %v29_v9 }
 0x106   :  { %v135_v11 = vpop.f32.mrb[0].mxu0 }
 0x107   :  { %v136_v12 = vadd.f32 %v147_v10, %v135_v11  ;;  %v183_v13 = vpop.f32.mrb[1].mxu0 }
 0x108   :  { %v138_v14 = vpop.f32.mrb[2].mxu0 }
 0x109   :  { %141 = vst [vmem:[%s271_s3] sm:$0xff] %v136_v12  ;;  %v184_v15 = vpop.f32.mrb[3].mxu0 }
 0x10a   :  { %146 = vsyncpa [#allocation3], 1 }

</bundles_post_ra>
